<compile_context>
chip_gen: v6e
topology: v6e:2x2x1
jax: 0.10.0
libtpu: 0.0.40
codegen_flags: <defaults>
</compile_context>

<pallas_src>
import jax
import jax.numpy as jnp
from jax.experimental import pallas as pl
from jax.experimental.pallas import tpu as pltpu

MIN_STD = 0.1
MAX_STD = 2.0


def _silu(v):
    return v * jax.nn.sigmoid(v)


def _round_up(n, m):
    return ((n + m - 1) // m) * m


def dynamics_kernel(x_ref,
                    w1_ref, b1_ref,
                    w2_ref, b2_ref,
                    w3_ref, b3_ref,
                    w4_ref, b4_ref,
                    out_ref):
    # 4-layer MLP with SiLU activations (MXU matmuls, f32 accumulation).
    h = jnp.dot(x_ref[...], w1_ref[...],
                preferred_element_type=jnp.float32) + b1_ref[...]
    h = _silu(h)
    h = jnp.dot(h, w2_ref[...],
                preferred_element_type=jnp.float32) + b2_ref[...]
    h = _silu(h)
    h = jnp.dot(h, w3_ref[...],
                preferred_element_type=jnp.float32) + b3_ref[...]
    h = _silu(h)
    y = jnp.dot(h, w4_ref[...],
                preferred_element_type=jnp.float32) + b4_ref[...]

    # get_dist(..., 'gaussian'): first half is the mean (identity), second half
    # is the std clipped to [MIN_STD, MAX_STD]. Apply the clip with a lane mask
    # and emit one lane-dense (TM, out_channels) block; the wrapper slices.
    half = y.shape[1] // 2
    lane = jax.lax.broadcasted_iota(jnp.int32, y.shape, dimension=1)
    out_ref[...] = jnp.where(lane >= half, jnp.clip(y, MIN_STD, MAX_STD), y)


def dynamics_forward(x, params, *, tm_max=1024):
    """x: (B, latent_state_dim + 1) float32.

    Returns (mean, std), each (B, latent_state_shape[0])."""
    (w1, b1), (w2, b2), (w3, b3), (w4, b4) = params
    B, in_dim = x.shape
    hidden = w1.shape[1]
    out_channels = w4.shape[1]
    half = out_channels // 2

    # Batch tile: multiple of 8 sublanes, capped at tm_max. Pad B up to a
    # multiple of the tile so every grid step sees a full block.
    tm = min(tm_max, _round_up(B, 8))
    b_pad = _round_up(B, tm)
    if b_pad != B:
        x = jnp.pad(x, ((0, b_pad - B), (0, 0)))
    grid = (b_pad // tm,)

    # Advisory cost estimate (helps the XLA scheduler overlap this call).
    flops = 2 * b_pad * (in_dim * hidden + 2 * hidden * hidden
                         + hidden * out_channels)
    transcendentals = 3 * b_pad * hidden  # one sigmoid per hidden activation
    weight_bytes = sum(int(w.size + b.size) for (w, b) in params) * 4
    bytes_accessed = b_pad * (in_dim + out_channels) * 4 + weight_bytes

    # Constant index_map keeps the (tiny, ~12 KB) weights VMEM-resident across
    # all batch tiles; only x / output stream through the pipeline.
    def resident(shape):
        return pl.BlockSpec(shape, lambda i: (0, 0))

    out = pl.pallas_call(
        dynamics_kernel,
        out_shape=jax.ShapeDtypeStruct((b_pad, out_channels), jnp.float32),
        grid=grid,
        in_specs=[
            pl.BlockSpec((tm, in_dim), lambda i: (i, 0)),        # x (tiled)
            resident(w1.shape), resident(b1.shape),
            resident(w2.shape), resident(b2.shape),
            resident(w3.shape), resident(b3.shape),
            resident(w4.shape), resident(b4.shape),
        ],
        out_specs=pl.BlockSpec((tm, out_channels), lambda i: (i, 0)),
        compiler_params=pltpu.CompilerParams(
            dimension_semantics=("parallel",)),
        cost_estimate=pl.CostEstimate(
            flops=flops,
            transcendentals=transcendentals,
            bytes_accessed=bytes_accessed),
    )(x, w1, b1, w2, b2, w3, b3, w4, b4)

    out = out[:B]
    return out[:, :half], out[:, half:]


def make_params(key, in_dim, hidden, out_dim):
    """Deterministic PyTorch-Linear-style init. Weights stored as (in, out)."""
    dims = [(in_dim, hidden), (hidden, hidden), (hidden, hidden),
            (hidden, out_dim)]
    params = []
    for (fan_in, fan_out) in dims:
        key, kw, kb = jax.random.split(key, 3)
        bound = 1.0 / jnp.sqrt(fan_in)
        w = jax.random.uniform(kw, (fan_in, fan_out), jnp.float32, -bound, bound)
        b = jax.random.uniform(kb, (1, fan_out), jnp.float32, -bound, bound)
        params.append((w, b))
    return params


def reference_forward(x, params):
    h = x
    for i, (w, b) in enumerate(params):
        h = h @ w + b
        if i < len(params) - 1:
            h = _silu(h)
    half = h.shape[1] // 2
    return h[:, :half], jnp.clip(h[:, half:], MIN_STD, MAX_STD)


if __name__ == "__main__":
    # Module config.
    latent_state_type = "gaussian"
    latent_state_shape = (8,)
    hidden_channels = 32
    latent_state_dim = 1
    for d in latent_state_shape:
        latent_state_dim *= d
    in_dim = latent_state_dim + 1             # 9  (latent state + action scalar)
    out_channels = 2 * latent_state_shape[0]  # 16 (mean + std)

    key = jax.random.PRNGKey(0)
    k_x, k_p, k_x2 = jax.random.split(key, 3)
    params = make_params(k_p, in_dim, hidden_channels, out_channels)

    # Small demo batch (B=2): single grid step, padded to 8 sublanes.
    B = 2
    x = jax.random.normal(k_x, (B, in_dim), jnp.float32)
    mean, std = dynamics_forward(x, params)
    jax.block_until_ready((mean, std))
    ref_mean, ref_std = reference_forward(x, params)
    assert mean.shape == (B, latent_state_shape[0])
    assert std.shape == (B, latent_state_shape[0])
    assert jnp.allclose(mean, ref_mean, atol=1e-5, rtol=1e-5)
    assert jnp.allclose(std, ref_std, atol=1e-5, rtol=1e-5)

    # Larger batch to exercise the padding path (B=600 -> 608 rows, 1 step).
    B2 = 600
    x2 = jax.random.normal(k_x2, (B2, in_dim), jnp.float32)
    mean2, std2 = dynamics_forward(x2, params)
    jax.block_until_ready((mean2, std2))
    ref_mean2, ref_std2 = reference_forward(x2, params)
    assert mean2.shape == (B2, latent_state_shape[0])
    assert std2.shape == (B2, latent_state_shape[0])
    assert jnp.allclose(mean2, ref_mean2, atol=1e-5, rtol=1e-5)
    assert jnp.allclose(std2, ref_std2, atol=1e-5, rtol=1e-5)

    # Multi-tile batch to exercise the batch grid (B=3000 -> grid=(3,)).
    B3 = 3000
    x3 = jax.random.normal(jax.random.PRNGKey(7), (B3, in_dim), jnp.float32)
    mean3, std3 = dynamics_forward(x3, params)
    jax.block_until_ready((mean3, std3))
    ref_mean3, ref_std3 = reference_forward(x3, params)
    assert jnp.allclose(mean3, ref_mean3, atol=1e-5, rtol=1e-5)
    assert jnp.allclose(std3, ref_std3, atol=1e-5, rtol=1e-5)

    # TODO(synk): sample()/predict() use torch.distributions sampling and the
    # reward/done/embedding sub-nets; only the deterministic forward
    # (dynamics_net + get_dist) is implemented here.
    print("KERNEL_OK")
</pallas_src>

<mosaic_0001>
module attributes {stable_mosaic.version = 11 : i64} {
  func.func @dynamics_kernel(%arg0: i32, %arg1: memref<8x9xf32, #tpu.memory_space<vmem>>, %arg2: memref<9x32xf32, #tpu.memory_space<vmem>>, %arg3: memref<1x32xf32, #tpu.memory_space<vmem>>, %arg4: memref<32x32xf32, #tpu.memory_space<vmem>>, %arg5: memref<1x32xf32, #tpu.memory_space<vmem>>, %arg6: memref<32x32xf32, #tpu.memory_space<vmem>>, %arg7: memref<1x32xf32, #tpu.memory_space<vmem>>, %arg8: memref<32x16xf32, #tpu.memory_space<vmem>>, %arg9: memref<1x16xf32, #tpu.memory_space<vmem>>, %arg10: memref<8x16xf32, #tpu.memory_space<vmem>>) attributes {dimension_semantics = [#tpu.dimension_semantics<parallel>], iteration_bounds = array<i64: 1>, scalar_prefetch = 0 : i64, scratch_operands = 0 : i64, tpu.core_type = #tpu.core_type<tc>, window_params = [{transform_indices = @transform_0, window_bounds = array<i64: 8, 9>}, {pipeline_mode = #tpu.pipeline_mode<synchronous>, transform_indices = @transform_1, window_bounds = array<i64: 9, 32>}, {pipeline_mode = #tpu.pipeline_mode<synchronous>, transform_indices = @transform_2, window_bounds = array<i64: 1, 32>}, {pipeline_mode = #tpu.pipeline_mode<synchronous>, transform_indices = @transform_3, window_bounds = array<i64: 32, 32>}, {pipeline_mode = #tpu.pipeline_mode<synchronous>, transform_indices = @transform_4, window_bounds = array<i64: 1, 32>}, {pipeline_mode = #tpu.pipeline_mode<synchronous>, transform_indices = @transform_5, window_bounds = array<i64: 32, 32>}, {pipeline_mode = #tpu.pipeline_mode<synchronous>, transform_indices = @transform_6, window_bounds = array<i64: 1, 32>}, {pipeline_mode = #tpu.pipeline_mode<synchronous>, transform_indices = @transform_7, window_bounds = array<i64: 32, 16>}, {pipeline_mode = #tpu.pipeline_mode<synchronous>, transform_indices = @transform_8, window_bounds = array<i64: 1, 16>}, {transform_indices = @transform_9, window_bounds = array<i64: 8, 16>}]} {
    %c0 = arith.constant 0 : index
    %c0_0 = arith.constant 0 : index
    %0 = vector.load %arg1[%c0, %c0_0] : memref<8x9xf32, #tpu.memory_space<vmem>>, vector<8x9xf32>
    %c0_1 = arith.constant 0 : index
    %c0_2 = arith.constant 0 : index
    %1 = vector.load %arg2[%c0_1, %c0_2] : memref<9x32xf32, #tpu.memory_space<vmem>>, vector<9x32xf32>
    %cst = arith.constant dense<0.000000e+00> : vector<8x32xf32>
    %2 = tpu.matmul %0, %1, %cst {dimension_numbers = #tpu.dot_dimension_numbers<[1], [0], [0], [1], [0, 0, 1, 1], [], []>} : vector<8x9xf32>, vector<9x32xf32>, vector<8x32xf32> -> vector<8x32xf32>
    %c0_3 = arith.constant 0 : index
    %c0_4 = arith.constant 0 : index
    %3 = vector.load %arg3[%c0_3, %c0_4] : memref<1x32xf32, #tpu.memory_space<vmem>>, vector<1x32xf32>
    %4 = vector.broadcast %3 : vector<1x32xf32> to vector<8x32xf32>
    %5 = arith.addf %2, %4 : vector<8x32xf32>
    %6 = arith.negf %5 : vector<8x32xf32>
    %7 = math.exp %6 : vector<8x32xf32>
    %cst_5 = arith.constant 1.000000e+00 : f32
    %8 = vector.broadcast %cst_5 : f32 to vector<8x32xf32>
    %9 = arith.addf %8, %7 : vector<8x32xf32>
    %10 = arith.divf %8, %9 : vector<8x32xf32>
    %11 = arith.mulf %5, %10 : vector<8x32xf32>
    %c0_6 = arith.constant 0 : index
    %c0_7 = arith.constant 0 : index
    %12 = vector.load %arg4[%c0_6, %c0_7] : memref<32x32xf32, #tpu.memory_space<vmem>>, vector<32x32xf32>
    %cst_8 = arith.constant dense<0.000000e+00> : vector<8x32xf32>
    %13 = tpu.matmul %11, %12, %cst_8 {dimension_numbers = #tpu.dot_dimension_numbers<[1], [0], [0], [1], [0, 0, 1, 1], [], []>} : vector<8x32xf32>, vector<32x32xf32>, vector<8x32xf32> -> vector<8x32xf32>
    %c0_9 = arith.constant 0 : index
    %c0_10 = arith.constant 0 : index
    %14 = vector.load %arg5[%c0_9, %c0_10] : memref<1x32xf32, #tpu.memory_space<vmem>>, vector<1x32xf32>
    %15 = vector.broadcast %14 : vector<1x32xf32> to vector<8x32xf32>
    %16 = arith.addf %13, %15 : vector<8x32xf32>
    %17 = arith.negf %16 : vector<8x32xf32>
    %18 = math.exp %17 : vector<8x32xf32>
    %cst_11 = arith.constant 1.000000e+00 : f32
    %19 = vector.broadcast %cst_11 : f32 to vector<8x32xf32>
    %20 = arith.addf %19, %18 : vector<8x32xf32>
    %21 = arith.divf %19, %20 : vector<8x32xf32>
    %22 = arith.mulf %16, %21 : vector<8x32xf32>
    %c0_12 = arith.constant 0 : index
    %c0_13 = arith.constant 0 : index
    %23 = vector.load %arg6[%c0_12, %c0_13] : memref<32x32xf32, #tpu.memory_space<vmem>>, vector<32x32xf32>
    %cst_14 = arith.constant dense<0.000000e+00> : vector<8x32xf32>
    %24 = tpu.matmul %22, %23, %cst_14 {dimension_numbers = #tpu.dot_dimension_numbers<[1], [0], [0], [1], [0, 0, 1, 1], [], []>} : vector<8x32xf32>, vector<32x32xf32>, vector<8x32xf32> -> vector<8x32xf32>
    %c0_15 = arith.constant 0 : index
    %c0_16 = arith.constant 0 : index
    %25 = vector.load %arg7[%c0_15, %c0_16] : memref<1x32xf32, #tpu.memory_space<vmem>>, vector<1x32xf32>
    %26 = vector.broadcast %25 : vector<1x32xf32> to vector<8x32xf32>
    %27 = arith.addf %24, %26 : vector<8x32xf32>
    %28 = arith.negf %27 : vector<8x32xf32>
    %29 = math.exp %28 : vector<8x32xf32>
    %cst_17 = arith.constant 1.000000e+00 : f32
    %30 = vector.broadcast %cst_17 : f32 to vector<8x32xf32>
    %31 = arith.addf %30, %29 : vector<8x32xf32>
    %32 = arith.divf %30, %31 : vector<8x32xf32>
    %33 = arith.mulf %27, %32 : vector<8x32xf32>
    %c0_18 = arith.constant 0 : index
    %c0_19 = arith.constant 0 : index
    %34 = vector.load %arg8[%c0_18, %c0_19] : memref<32x16xf32, #tpu.memory_space<vmem>>, vector<32x16xf32>
    %cst_20 = arith.constant dense<0.000000e+00> : vector<8x16xf32>
    %35 = tpu.matmul %33, %34, %cst_20 {dimension_numbers = #tpu.dot_dimension_numbers<[1], [0], [0], [1], [0, 0, 1, 1], [], []>} : vector<8x32xf32>, vector<32x16xf32>, vector<8x16xf32> -> vector<8x16xf32>
    %c0_21 = arith.constant 0 : index
    %c0_22 = arith.constant 0 : index
    %36 = vector.load %arg9[%c0_21, %c0_22] : memref<1x16xf32, #tpu.memory_space<vmem>>, vector<1x16xf32>
    %37 = vector.broadcast %36 : vector<1x16xf32> to vector<8x16xf32>
    %38 = arith.addf %35, %37 : vector<8x16xf32>
    %39 = tpu.iota {dimensions = array<i32: 1>} : vector<8x16xi32>
    %c8_i32 = arith.constant 8 : i32
    %40 = vector.broadcast %c8_i32 : i32 to vector<8x16xi32>
    %41 = arith.cmpi sge, %39, %40 : vector<8x16xi32>
    %cst_23 = arith.constant 1.000000e-01 : f32
    %cst_24 = arith.constant 2.000000e+00 : f32
    %42 = vector.broadcast %cst_23 : f32 to vector<8x16xf32>
    %43 = arith.maximumf %42, %38 : vector<8x16xf32>
    %44 = vector.broadcast %cst_24 : f32 to vector<8x16xf32>
    %45 = arith.minimumf %44, %43 : vector<8x16xf32>
    %46 = arith.select %41, %45, %38 : vector<8x16xi1>, vector<8x16xf32>
    %c0_25 = arith.constant 0 : index
    %c0_26 = arith.constant 0 : index
    %47 = vector.load %arg10[%c0_25, %c0_26] : memref<8x16xf32, #tpu.memory_space<vmem>>, vector<8x16xf32>
    tpu.vector_store %arg10[%c0_25, %c0_26], %46 {strides = array<i32>} : memref<8x16xf32, #tpu.memory_space<vmem>>, vector<8x16xf32>,
    return
  }
  func.func @transform_0(%arg0: i32) -> (i32, i32) {
    %c0_i32 = arith.constant 0 : i32
    %c0_i32_0 = arith.constant 0 : i32
    return %arg0, %c0_i32 : i32, i32
  }
  func.func @transform_1(%arg0: i32) -> (i32, i32) {
    %c0_i32 = arith.constant 0 : i32
    %c0_i32_0 = arith.constant 0 : i32
    %c0_i32_1 = arith.constant 0 : i32
    return %c0_i32, %c0_i32_0 : i32, i32
  }
  func.func @transform_2(%arg0: i32) -> (i32, i32) {
    %c0_i32 = arith.constant 0 : i32
    %c0_i32_0 = arith.constant 0 : i32
    %c0_i32_1 = arith.constant 0 : i32
    return %c0_i32, %c0_i32_0 : i32, i32
  }
  func.func @transform_3(%arg0: i32) -> (i32, i32) {
    %c0_i32 = arith.constant 0 : i32
    %c0_i32_0 = arith.constant 0 : i32
    %c0_i32_1 = arith.constant 0 : i32
    return %c0_i32, %c0_i32_0 : i32, i32
  }
  func.func @transform_4(%arg0: i32) -> (i32, i32) {
    %c0_i32 = arith.constant 0 : i32
    %c0_i32_0 = arith.constant 0 : i32
    %c0_i32_1 = arith.constant 0 : i32
    return %c0_i32, %c0_i32_0 : i32, i32
  }
  func.func @transform_5(%arg0: i32) -> (i32, i32) {
    %c0_i32 = arith.constant 0 : i32
    %c0_i32_0 = arith.constant 0 : i32
    %c0_i32_1 = arith.constant 0 : i32
    return %c0_i32, %c0_i32_0 : i32, i32
  }
  func.func @transform_6(%arg0: i32) -> (i32, i32) {
    %c0_i32 = arith.constant 0 : i32
    %c0_i32_0 = arith.constant 0 : i32
    %c0_i32_1 = arith.constant 0 : i32
    return %c0_i32, %c0_i32_0 : i32, i32
  }
  func.func @transform_7(%arg0: i32) -> (i32, i32) {
    %c0_i32 = arith.constant 0 : i32
    %c0_i32_0 = arith.constant 0 : i32
    %c0_i32_1 = arith.constant 0 : i32
    return %c0_i32, %c0_i32_0 : i32, i32
  }
  func.func @transform_8(%arg0: i32) -> (i32, i32) {
    %c0_i32 = arith.constant 0 : i32
    %c0_i32_0 = arith.constant 0 : i32
    %c0_i32_1 = arith.constant 0 : i32
    return %c0_i32, %c0_i32_0 : i32, i32
  }
  func.func @transform_9(%arg0: i32) -> (i32, i32) {
    %c0_i32 = arith.constant 0 : i32
    %c0_i32_0 = arith.constant 0 : i32
    return %arg0, %c0_i32 : i32, i32
  }
}

</mosaic_0001>

<bundles_post_ra>
// kernel: tpu_custom_call.1
= control target key start
LH: loop header
LB: loop body
LE: loop exit
PB: predicated region body
PF: predicated region fallthrough
CT: control target
= control target key end

     0   :  { %14 = vsyncpa [#allocation3], 0  ;;  %s733_s0 = inlined_call_operand.hbm [shape: f32[8,9], index: 0, kind: input, shape index: {}]   ;;  %s734_s1 = inlined_call_operand.vmem [shape: f32[9,32], index: 1, kind: input, shape index: {}]   ;;  %s735_s2 = inlined_call_operand.vmem [shape: f32[1,32], index: 2, kind: input, shape index: {}]   ;;  %s736_s3 = inlined_call_operand.vmem [shape: f32[32,32], index: 3, kind: input, shape index: {}]   ;;  %s737_s4 = inlined_call_operand.vmem [shape: f32[1,32], index: 4, kind: input, shape index: {}]   ;;  %s738_s5 = inlined_call_operand.hbm [shape: f32[32,32], index: 5, kind: input, shape index: {}]   ;;  %s739_s6 = inlined_call_operand.vmem [shape: f32[1,32], index: 6, kind: input, shape index: {}]   ;;  %s740_s7 = inlined_call_operand.vmem [shape: f32[32,16], index: 7, kind: input, shape index: {}]   ;;  %s741_s8 = inlined_call_operand.vmem [shape: f32[1,16], index: 8, kind: input, shape index: {}]   ;;  %s742_s9 = inlined_call_operand.hbm [shape: f32[8,16], index: 9, kind: output, shape index: {}]  }
   0x1   :  { %15 = vsyncpa [#allocation6], 0 }
   0x2   :  { %16 = vsyncpa [#allocation4], 0  ;;  %s600_s30 = smov [#allocation2]   ;;  %s601_s11 = smov [#allocation5]  }
   0x3   :  { %s23_s10 = sshll.u32 %s600_s30, 4  ;;  %s40_s12 = sshll.u32 %s601_s11, 4  ;;  %s24_s10 = int_to_ptr.vmem [resolvable:$true] %s23_s10  ;;  %s41_s12 = int_to_ptr.vmem [resolvable:$true] %s40_s12 }
   0x4   :  { %s542_s13 = scalar_lea.vmem %s24_s10, 128  ;;  %p547_p1 = scmp.lt.s32.totalorder %s24_s10, %s24_s10 }
   0x5   :  { %p543_p0 = scmp.ne.s32.totalorder %s24_s10, %s542_s13  ;;  %p548_p2 = scmp.lt.s32.totalorder %s542_s13, %s542_s13 }
   0x7   :  { %p549_p3 = por %p548_p2, %p547_p1 }
   0x9   :  { %p550_p4 = pnand %p549_p3, %p543_p0 }
   0xb   :  { %553 = shalt.err (!%p550_p4)
}
   0xc   :  { %26 = dma.hbm_to_vmem [thread:$0]  %s733_s0, 128, %s24_s10, [#allocation3]  }
   0xd   :  { %s562_s16 = scalar_lea.vmem %s41_s12, 512  ;;  %p567_p6 = scmp.lt.s32.totalorder %s41_s12, %s41_s12 }
   0xe   :  { %p563_p5 = scmp.ne.s32.totalorder %s41_s12, %s562_s16  ;;  %p568_p7 = scmp.lt.s32.totalorder %s562_s16, %s562_s16 }
  0x10   :  { %p569_p8 = por %p568_p7, %p567_p6 }
  0x12   :  { %p570_p9 = pnand %p569_p8, %p563_p5 }
  0x14   :  { %573 = shalt.err (!%p570_p9)
}
  0x15   :  { %s602_s17 = smov 128   ;;  %s603_s18 = smov 8  }
  0x16   :  { %46 = dma.hbm_to_vmem [thread:$0]  %s738_s5, 512, %s41_s12, [#allocation6], %s602_s17, %s602_s17, %s603_s18  }
  0x17   :  { %594 = dma.done.wait [#allocation3], 128  }
  0x18   :  { %595 = vsyncadd [#allocation3], 4294967168 }
  0x19   :  { %596 = dma.done.wait [#allocation6], 512  }
  0x1a   :  { %597 = vsyncadd [#allocation6], 4294966784  ;;  %v604_v0 = vmov 0.0   ;;  %vm605_vm0 = vmmov 0   ;;  %vm73_vm1 = vcmask 1040384   ;;  %v60_v2 = vld [vmem:[%s734_s1] sm:$0xff]  ;;  %v421_v43 = vlaneseq }
  0x1b   :  { %475 = vmatprep.subr.mxu0 %v604_v0  ;;  %479 = vmatprep.mubr.msk.f32.mxu0 %vm605_vm0, %v604_v0  ;;  %v61_v1 = vld [vmem:[%s734_s1 + $0x8] sm:$0x1]  ;;  %v59_v3 = vld [vmem:[#allocation2] sm:$0xff]  ;;  %vm69_vm2 = vcmask 72704   ;;  %v157_v4 = vld [vmem:[%s736_s3 + $0x18] sm:$0xff]  ;;  %vm165_vm3 = vcmask 261120  }
  0x1c   :  { %482 = vmatprep.subr.mxu1 %v604_v0  ;;  %490 = vmatprep.mubr.msk.f32.mxu1 %vm605_vm0, %v604_v0  ;;  %v156_v5 = vld [vmem:[%s736_s3 + $0x10] sm:$0xff]  ;;  %v155_v6 = vld [vmem:[%s736_s3 + $0x8] sm:$0xff]  ;;  %v154_v7 = vld [vmem:[%s736_s3] sm:$0xff]  ;;  %v422_v46 = vand.u32 127, %v421_v43  ;;  %vm427_vm5 = vcmask 130048  }
  0x1d   :  { %476 = vmatpush3.msk.msra.mxu0 %vm73_vm1, %v61_v1  ;;  %483 = vmatpush3.msra.mxu1 %v157_v4  ;;  %v445_v8 = vld [vmem:[%s735_s2] ss:$0 sm:$0xff]  ;;  %v248_v18 = vld [vmem:[#allocation5 + $0x10] sm:$0xff]  ;;  %v247_v19 = vld [vmem:[#allocation5 + $0x8] sm:$0xff] }
  0x1e   :  { %477 = vmatprep.subr.mxu0 %v604_v0  ;;  %484 = vmatprep.subr.mxu1 %v604_v0  ;;  %v249_v17 = vld [vmem:[#allocation5 + $0x18] sm:$0xff]  ;;  %v246_v20 = vld [vmem:[#allocation5] sm:$0xff]  ;;  %v340_v30 = vld [vmem:[%s740_s7 + $0x18] sm:$0xff]  ;;  %vm423_vm4 = vcmp.ge.s32.totalorder %v422_v46, 8 }
  0x1f   :  { %478 = vmatpush3.msra.mxu0 %v60_v2  ;;  %485 = vmatpush3.msra.mxu1 %v156_v5  ;;  %v449_v21 = vld [vmem:[%s737_s4] ss:$0 sm:$0xff]  ;;  %v339_v31 = vld [vmem:[%s740_s7 + $0x10] sm:$0xff]  ;;  %v338_v32 = vld [vmem:[%s740_s7 + $0x8] sm:$0xff] }
  0x20   :  { %480 = vmatmul.mubr.msk.f32.vlgmr.msra.gmra.mxu0 %vm69_vm2, %v59_v3  ;;  %493 = vmatprep.subr.mxu0 %v604_v0  ;;  %v337_v33 = vld [vmem:[%s740_s7] sm:$0xff] }
  0x21   :  { %501 = vmatprep.mubr.msk.f32.mxu0 %vm605_vm0, %v604_v0  ;;  %486 = vmatprep.subr.mxu1 %v604_v0  ;;  %v452_v34 = vld [vmem:[%s739_s6] ss:$0 sm:$0xff]  ;;  %s606_s6 = smov [#allocation7]  }
  0x22   :  { %487 = vmatpush3.msra.mxu1 %v155_v6  ;;  %494 = vmatpush3.msra.mxu0 %v249_v17  ;;  %v455_v44 = vld [vmem:[%s741_s8] ss:$0 sm:$0xff]  ;;  %s435_s0 = sshll.u32 %s606_s6, 4  ;;  %s436_s0 = int_to_ptr.vmem [resolvable:$true] %s435_s0 }
  0x23   :  { %488 = vmatprep.subr.mxu1 %v604_v0  ;;  %495 = vmatprep.subr.mxu0 %v604_v0  ;;  %s574_s21 = scalar_lea.vmem %s436_s0, 128  ;;  %p579_p11 = scmp.lt.s32.totalorder %s436_s0, %s436_s0 }
  0x24   :  { %489 = vmatpush3.msra.mxu1 %v154_v7  ;;  %496 = vmatpush3.msra.mxu0 %v248_v18  ;;  %p575_p10 = scmp.ne.s32.totalorder %s436_s0, %s574_s21  ;;  %p580_p12 = scmp.lt.s32.totalorder %s574_s21, %s574_s21 }
  0x25   :  { %504 = vmatprep.subr.mxu1 %v604_v0  ;;  %497 = vmatprep.subr.mxu0 %v604_v0 }
  0x26   :  { %498 = vmatpush3.msra.mxu0 %v247_v19  ;;  %p581_p13 = por %p580_p12, %p579_p11 }
  0x27   :  { %499 = vmatprep.subr.mxu0 %v604_v0 }
  0x28   :  { %500 = vmatpush3.msra.mxu0 %v246_v20  ;;  %p582_p0 = pnand %p581_p13, %p575_p10 }
  0xe0   :  { %v143_v9 = vpop.f32.mrf.mxu0 }
  0xe1   :  { %v144_v10 = vadd.f32 %v445_v8, %v143_v9 }
  0xe2   :  { %v481_v11 = vpop.f32.mrf.mxu0 }
  0xe3   :  { %v448_v12 = vmul.f32 -1.442695, %v144_v10 }
  0xe5   :  { %522 = vpow2.f32 %v448_v12 }
  0xf2   :  { %v523_v13 = vpop.eup %522 }
  0xf3   :  { %v150_v14 = vadd.f32 1.0, %v523_v13 }
  0xf5   :  { %524 = vrcp.f32 %v150_v14 }
 0x102   :  { %v525_v15 = vpop.eup %524 }
 0x103   :  { %v153_v16 = vmul.f32 %v525_v15, %v144_v10 }
 0x105   :  { %491 = vmatmul.mubr.msk.f32.vlgmr.msra.gmra.mxu1 %vm165_vm3, %v153_v16 }
 0x106   :  { %512 = vmatprep.mubr.msk.f32.mxu1 %vm605_vm0, %v604_v0  ;;  %505 = vmatpush3.msra.mxu1 %v340_v30 }
 0x107   :  { %506 = vmatprep.subr.mxu1 %v604_v0 }
 0x108   :  { %507 = vmatpush3.msra.mxu1 %v339_v31 }
 0x109   :  { %508 = vmatprep.subr.mxu1 %v604_v0 }
 0x10a   :  { %509 = vmatpush3.msra.mxu1 %v338_v32 }
 0x10b   :  { %510 = vmatprep.subr.mxu1 %v604_v0 }
 0x10c   :  { %511 = vmatpush3.msra.mxu1 %v337_v33 }
 0x1c5   :  { %v235_v22 = vpop.f32.mrf.mxu1 }
 0x1c6   :  { %v236_v23 = vadd.f32 %v449_v21, %v235_v22 }
 0x1c7   :  { %v492_v24 = vpop.f32.mrf.mxu1 }
 0x1c8   :  { %v451_v25 = vmul.f32 -1.442695, %v236_v23 }
 0x1ca   :  { %526 = vpow2.f32 %v451_v25 }
 0x1d7   :  { %v527_v26 = vpop.eup %526 }
 0x1d8   :  { %v242_v27 = vadd.f32 1.0, %v527_v26 }
 0x1da   :  { %528 = vrcp.f32 %v242_v27 }
 0x1e7   :  { %v529_v28 = vpop.eup %528 }
 0x1e8   :  { %v245_v29 = vmul.f32 %v529_v28, %v236_v23 }
 0x1ea   :  { %502 = vmatmul.mubr.msk.f32.vlgmr.msra.gmra.mxu0 %vm165_vm3, %v245_v29 }
 0x2aa   :  { %v326_v35 = vpop.f32.mrf.mxu0 }
 0x2ab   :  { %v327_v36 = vadd.f32 %v452_v34, %v326_v35 }
 0x2ac   :  { %v503_v37 = vpop.f32.mrf.mxu0 }
 0x2ad   :  { %v454_v38 = vmul.f32 -1.442695, %v327_v36 }
 0x2af   :  { %530 = vpow2.f32 %v454_v38 }
 0x2bc   :  { %v531_v39 = vpop.eup %530 }
 0x2bd   :  { %v333_v40 = vadd.f32 1.0, %v531_v39 }
 0x2bf   :  { %532 = vrcp.f32 %v333_v40 }
 0x2cc   :  { %v533_v41 = vpop.eup %532 }
 0x2cd   :  { %v336_v42 = vmul.f32 %v533_v41, %v327_v36 }
 0x2cf   :  { %513 = vmatmul.mubr.msk.f32.vlgmr.msra.gmra.mxu1 %vm165_vm3, %v336_v42 }
 0x38f   :  { %v417_v45 = vpop.f32.mrf.mxu1 }
 0x390   :  { %v418_v47 = vadd.f32 %v455_v44, %v417_v45 }
 0x391   :  { %v514_v48 = vpop.f32.mrf.mxu1 }
 0x392   :  { %v424_v49 = vmax.f32 %v418_v47, 0.1 }
 0x394   :  { %v425_v50 = vmin.f32 %v424_v49, 2.0 }
 0x396   :  { %v426_v51 = vsel %vm423_vm4, %v425_v50, %v418_v47 }
 0x397   :  { %428 = vst.msk [vmem:[#allocation7] sm:$0xff] %vm427_vm5, %v426_v51 }
 0x398   :  { %585 = shalt.err (!%p582_p0)
}
 0x399   :  { %438 = dma.vmem_to_hbm [thread:$0]  %s436_s0, 128, %s742_s9, [#allocation4]  }
 0x39a   :  { %598 = dma.done.wait [#allocation4], 128  }
 0x39b   :  { %599 = vsyncadd [#allocation4], 4294967168 }
 0x39c   :  { %442 = vsyncpa [#allocation3], 1 }
 0x39d   :  { %443 = vsyncpa [#allocation6], 1 }
 0x39e   :  { %444 = vsyncpa [#allocation4], 1 }

</bundles_post_ra>
